<compile_context>
chip_gen: v7x
topology: tpu7x:2x2x1
jax: 0.10.0
libtpu: 0.0.40
codegen_flags: <defaults>
</compile_context>

<pallas_src>
import jax
import jax.numpy as jnp
from jax.experimental import pallas as pl
from jax.experimental.pallas import tpu as pltpu


def _e2e_kernel(x_ref, w1a_ref, w2_ref, bias_ref, rrep_ref, rtile_ref, o_ref):
    # x_ref    : (NB, C, d, d)   dims (n, c, i, j)
    # w1a_ref  : (C*P, d)        row (c, p), col j      -- Conv2d kernel (1, d)
    # w2_ref   : (P, C*d)        row p, col (c, i)      -- Conv2d kernel (d, 1)
    # bias_ref : (P, 1)          b1 + b2
    # rrep_ref : (d, d*d)        rrep[i, i*d + j] = 1
    # rtile_ref: (d, d*d)        rtile[j, i*d + j] = 1
    # o_ref    : (NB, P, d*d)    lane-dense output slab
    NB, C, d, _ = x_ref.shape
    P = w2_ref.shape[0]
    K = C * d

    xb = x_ref[...]
    x_flat = xb.reshape(NB, K, d)                          # rows (c, i), cols j

    # b[n, p, j] = sum_{c,i} W2[p, (c,i)] * x[n, (c,i), j]
    w2b = jnp.broadcast_to(w2_ref[...][None], (NB, P, K))
    bmat = jnp.einsum("npk,nkj->npj", w2b, x_flat,
                      preferred_element_type=jnp.float32)  # (NB, P, d)

    # a[n, p, i] = sum_{c,j} W1[p, c, j] * x[n, c, i, j]
    # One batched matmul over all (c', c) pairs, then keep the c' == c blocks.
    w1b = jnp.broadcast_to(w1a_ref[...][None], (NB, C * P, d))
    z = jnp.einsum("nqj,nkj->nqk", w1b, x_flat,
                   preferred_element_type=jnp.float32)     # (NB, C*P, C*d)
    amat = z[:, 0:P, 0:d]
    for c in range(1, C):                                  # C is small & static
        amat = amat + z[:, c * P:(c + 1) * P, c * d:(c + 1) * d]
    amat = amat + bias_ref[...][None]                      # (NB, P, d), f32

    # Lane-dense assembly on the MXU: out[n, p, i*d + j] = a[n,p,i] + b[n,p,j]
    a2 = amat.reshape(NB * P, d)
    b2 = bmat.reshape(NB * P, d)
    out = (jnp.dot(a2, rrep_ref[...], preferred_element_type=jnp.float32)
           + jnp.dot(b2, rtile_ref[...], preferred_element_type=jnp.float32))
    o_ref[...] = out.reshape(NB, P, d * d).astype(o_ref.dtype)


def e2e_block(x, w1, b1, w2, b2, *, block_n=64):
    """x: (N, C, d, d); w1: (P, C, 1, d); w2: (P, C, d, 1); b1, b2: (P,)."""
    N, C, d, d2 = x.shape
    assert d == d2, "E2EBlock expects square spatial input (d x d)"
    P = w1.shape[0]

    # Batch-block size: amortize per-grid-step overhead, keep VMEM modest
    # (x block + out block double-buffered is ~1.5 MiB at NB=64, f32, d=16).
    NB = int(max(1, min(block_n, N)))
    n_pad = (-N) % NB
    if n_pad:
        x = jnp.pad(x, ((0, n_pad), (0, 0), (0, 0), (0, 0)))
    Npad = N + n_pad

    # Glue: tiny layout-only rearrangements of the parameters.
    w1_all = jnp.transpose(w1[:, :, 0, :], (1, 0, 2)).reshape(C * P, d)  # row (c, p)
    w2_flat = w2[:, :, :, 0].reshape(P, C * d)                           # col (c, i)
    bias = (b1 + b2).reshape(P, 1).astype(jnp.float32)
    eye = jnp.eye(d, dtype=jnp.float32)
    rrep = jnp.repeat(eye, d, axis=1)        # (d, d*d): rrep[i, i*d + j] = 1
    rtile = jnp.tile(eye, (1, d))            # (d, d*d): rtile[j, i*d + j] = 1

    grid_spec = pltpu.PrefetchScalarGridSpec(
        num_scalar_prefetch=0,
        grid=(Npad // NB,),
        in_specs=[
            pl.BlockSpec((NB, C, d, d), lambda g: (g, 0, 0, 0)),   # x
            pl.BlockSpec((C * P, d), lambda g: (0, 0)),            # w1 (c,p)-major
            pl.BlockSpec((P, C * d), lambda g: (0, 0)),            # w2 flat
            pl.BlockSpec((P, 1), lambda g: (0, 0)),                # bias
            pl.BlockSpec((d, d * d), lambda g: (0, 0)),            # rrep
            pl.BlockSpec((d, d * d), lambda g: (0, 0)),            # rtile
        ],
        out_specs=pl.BlockSpec((NB, P, d * d), lambda g: (g, 0, 0)),
    )

    out_flat = pl.pallas_call(
        _e2e_kernel,
        out_shape=jax.ShapeDtypeStruct((Npad, P, d * d), x.dtype),
        grid_spec=grid_spec,
        compiler_params=pltpu.CompilerParams(
            dimension_semantics=("parallel",)
        ),
    )(x, w1_all, w2_flat, bias, rrep, rtile)

    # Contiguous reshape back to NCHW (free in XLA); drop batch padding.
    return out_flat[:N].reshape(N, P, d, d)


def e2e_block_reference(x, w1, b1, w2, b2):
    """Pure-JAX reference matching the PyTorch forward exactly."""
    a = jnp.einsum("ncij,pcj->npi", x, w1[:, :, 0, :]) + b1[None, :, None]
    b = jnp.einsum("ncij,pci->npj", x, w2[:, :, :, 0]) + b2[None, :, None]
    return a[:, :, :, None] + b[:, :, None, :]


if __name__ == "__main__":
    key = jax.random.PRNGKey(0)
    N, C, P, d = 2, 4, 8, 16   # batch, in_planes, planes, example.size(3)

    k_x, k_w1, k_b1, k_w2, k_b2 = jax.random.split(key, 5)
    x = jax.random.normal(k_x, (N, C, d, d), dtype=jnp.float32)
    # Conv2d(in_planes=C, planes=P, kernel=(1, d)) and (d, 1), bias=True.
    w1 = jax.random.normal(k_w1, (P, C, 1, d), dtype=jnp.float32) * 0.1
    b1 = jax.random.normal(k_b1, (P,), dtype=jnp.float32) * 0.1
    w2 = jax.random.normal(k_w2, (P, C, d, 1), dtype=jnp.float32) * 0.1
    b2 = jax.random.normal(k_b2, (P,), dtype=jnp.float32) * 0.1

    out = jax.block_until_ready(e2e_block(x, w1, b1, w2, b2))
    ref = e2e_block_reference(x, w1, b1, w2, b2)
    assert out.shape == (N, P, d, d)
    assert jnp.allclose(out, ref, atol=1e-4, rtol=1e-4), "mismatch vs reference"

    # Also exercise the multi-block + batch-padding path (several n per step).
    N2 = 10
    x2 = jax.random.normal(jax.random.PRNGKey(1), (N2, C, d, d), dtype=jnp.float32)
    out2 = jax.block_until_ready(e2e_block(x2, w1, b1, w2, b2, block_n=4))
    ref2 = e2e_block_reference(x2, w1, b1, w2, b2)
    assert out2.shape == (N2, P, d, d)
    assert jnp.allclose(out2, ref2, atol=1e-4, rtol=1e-4), "mismatch (blocked path)"

    print("KERNEL_OK")
</pallas_src>

<mosaic_0001>
module attributes {stable_mosaic.version = 11 : i64} {
  func.func @_e2e_kernel(%arg0: i32, %arg1: memref<2x4x16x16xf32, #tpu.memory_space<vmem>>, %arg2: memref<32x16xf32, #tpu.memory_space<vmem>>, %arg3: memref<8x64xf32, #tpu.memory_space<vmem>>, %arg4: memref<8x1xf32, #tpu.memory_space<vmem>>, %arg5: memref<16x256xf32, #tpu.memory_space<vmem>>, %arg6: memref<16x256xf32, #tpu.memory_space<vmem>>, %arg7: memref<2x8x256xf32, #tpu.memory_space<vmem>>) attributes {dimension_semantics = [#tpu.dimension_semantics<parallel>], iteration_bounds = array<i64: 1>, scalar_prefetch = 0 : i64, scratch_operands = 0 : i64, tpu.core_type = #tpu.core_type<tc>, window_params = [{transform_indices = @transform_0, window_bounds = array<i64: 2, 4, 16, 16>}, {pipeline_mode = #tpu.pipeline_mode<synchronous>, transform_indices = @transform_1, window_bounds = array<i64: 32, 16>}, {pipeline_mode = #tpu.pipeline_mode<synchronous>, transform_indices = @transform_2, window_bounds = array<i64: 8, 64>}, {pipeline_mode = #tpu.pipeline_mode<synchronous>, transform_indices = @transform_3, window_bounds = array<i64: 8, 1>}, {pipeline_mode = #tpu.pipeline_mode<synchronous>, transform_indices = @transform_4, window_bounds = array<i64: 16, 256>}, {pipeline_mode = #tpu.pipeline_mode<synchronous>, transform_indices = @transform_5, window_bounds = array<i64: 16, 256>}, {transform_indices = @transform_6, window_bounds = array<i64: 2, 8, 256>}]} {
    %c0 = arith.constant 0 : index
    %c0_0 = arith.constant 0 : index
    %c0_1 = arith.constant 0 : index
    %c0_2 = arith.constant 0 : index
    %0 = vector.load %arg1[%c0, %c0_0, %c0_1, %c0_2] : memref<2x4x16x16xf32, #tpu.memory_space<vmem>>, vector<2x4x16x16xf32>
    %1 = vector.shape_cast %0 : vector<2x4x16x16xf32> to vector<2x64x16xf32>
    %c0_3 = arith.constant 0 : index
    %c0_4 = arith.constant 0 : index
    %2 = vector.load %arg3[%c0_3, %c0_4] : memref<8x64xf32, #tpu.memory_space<vmem>>, vector<8x64xf32>
    %3 = vector.shape_cast %2 : vector<8x64xf32> to vector<1x8x64xf32>
    %4 = vector.shape_cast %3 : vector<1x8x64xf32> to vector<1x8x64xf32>
    %5 = vector.broadcast %4 : vector<1x8x64xf32> to vector<2x8x64xf32>
    "tpu.trace_start"() <{level = 10 : i32, message = "npk,nkj->npj"}> : () -> ()
    %cst = arith.constant dense<0.000000e+00> : vector<2x8x16xf32>
    %6 = tpu.matmul %5, %1, %cst {dimension_numbers = #tpu.dot_dimension_numbers<[2], [1], [1], [2], [0, 0, 0, 1, 1, 2], [0], [0]>} : vector<2x8x64xf32>, vector<2x64x16xf32>, vector<2x8x16xf32> -> vector<2x8x16xf32>
    "tpu.trace_stop"() : () -> ()
    %c0_5 = arith.constant 0 : index
    %c0_6 = arith.constant 0 : index
    %7 = vector.load %arg2[%c0_5, %c0_6] : memref<32x16xf32, #tpu.memory_space<vmem>>, vector<32x16xf32>
    %8 = vector.shape_cast %7 : vector<32x16xf32> to vector<1x32x16xf32>
    %9 = vector.shape_cast %8 : vector<1x32x16xf32> to vector<1x32x16xf32>
    %10 = vector.broadcast %9 : vector<1x32x16xf32> to vector<2x32x16xf32>
    "tpu.trace_start"() <{level = 10 : i32, message = "nqj,nkj->nqk"}> : () -> ()
    %cst_7 = arith.constant dense<0.000000e+00> : vector<2x32x64xf32>
    %11 = tpu.matmul %10, %1, %cst_7 {dimension_numbers = #tpu.dot_dimension_numbers<[2], [2], [1], [1], [0, 0, 0, 1, 1, 1], [0], [0]>} : vector<2x32x16xf32>, vector<2x64x16xf32>, vector<2x32x64xf32> -> vector<2x32x64xf32>
    "tpu.trace_stop"() : () -> ()
    %12 = vector.extract_strided_slice %11 {offsets = [0, 0, 0], sizes = [2, 8, 16], strides = [1, 1, 1]} : vector<2x32x64xf32> to vector<2x8x16xf32>
    %13 = vector.extract_strided_slice %11 {offsets = [0, 8, 16], sizes = [2, 8, 16], strides = [1, 1, 1]} : vector<2x32x64xf32> to vector<2x8x16xf32>
    %14 = arith.addf %12, %13 : vector<2x8x16xf32>
    %15 = vector.extract_strided_slice %11 {offsets = [0, 16, 32], sizes = [2, 8, 16], strides = [1, 1, 1]} : vector<2x32x64xf32> to vector<2x8x16xf32>
    %16 = arith.addf %14, %15 : vector<2x8x16xf32>
    %17 = vector.extract_strided_slice %11 {offsets = [0, 24, 48], sizes = [2, 8, 16], strides = [1, 1, 1]} : vector<2x32x64xf32> to vector<2x8x16xf32>
    %18 = arith.addf %16, %17 : vector<2x8x16xf32>
    %c0_8 = arith.constant 0 : index
    %c0_9 = arith.constant 0 : index
    %19 = vector.load %arg4[%c0_8, %c0_9] : memref<8x1xf32, #tpu.memory_space<vmem>>, vector<8x1xf32>
    %20 = vector.shape_cast %19 : vector<8x1xf32> to vector<1x8x1xf32>
    %21 = vector.broadcast %20 : vector<1x8x1xf32> to vector<2x8x16xf32>
    %22 = arith.addf %18, %21 : vector<2x8x16xf32>
    %23 = vector.shape_cast %22 : vector<2x8x16xf32> to vector<16x16xf32>
    %24 = vector.shape_cast %6 : vector<2x8x16xf32> to vector<16x16xf32>
    %c0_10 = arith.constant 0 : index
    %c0_11 = arith.constant 0 : index
    %25 = vector.load %arg5[%c0_10, %c0_11] : memref<16x256xf32, #tpu.memory_space<vmem>>, vector<16x256xf32>
    %cst_12 = arith.constant dense<0.000000e+00> : vector<16x256xf32>
    %26 = tpu.matmul %23, %25, %cst_12 {dimension_numbers = #tpu.dot_dimension_numbers<[1], [0], [0], [1], [0, 0, 1, 1], [], []>} : vector<16x16xf32>, vector<16x256xf32>, vector<16x256xf32> -> vector<16x256xf32>
    %c0_13 = arith.constant 0 : index
    %c0_14 = arith.constant 0 : index
    %27 = vector.load %arg6[%c0_13, %c0_14] : memref<16x256xf32, #tpu.memory_space<vmem>>, vector<16x256xf32>
    %cst_15 = arith.constant dense<0.000000e+00> : vector<16x256xf32>
    %28 = tpu.matmul %24, %27, %cst_15 {dimension_numbers = #tpu.dot_dimension_numbers<[1], [0], [0], [1], [0, 0, 1, 1], [], []>} : vector<16x16xf32>, vector<16x256xf32>, vector<16x256xf32> -> vector<16x256xf32>
    %29 = arith.addf %26, %28 : vector<16x256xf32>
    %30 = vector.shape_cast %29 : vector<16x256xf32> to vector<2x8x256xf32>
    %c0_16 = arith.constant 0 : index
    %c0_17 = arith.constant 0 : index
    %c0_18 = arith.constant 0 : index
    %31 = vector.load %arg7[%c0_16, %c0_17, %c0_18] : memref<2x8x256xf32, #tpu.memory_space<vmem>>, vector<2x8x256xf32>
    tpu.vector_store %arg7[%c0_16, %c0_17, %c0_18], %30 {strides = array<i32>} : memref<2x8x256xf32, #tpu.memory_space<vmem>>, vector<2x8x256xf32>,
    return
  }
  func.func @transform_0(%arg0: i32) -> (i32, i32, i32, i32) {
    %c0_i32 = arith.constant 0 : i32
    %c0_i32_0 = arith.constant 0 : i32
    %c0_i32_1 = arith.constant 0 : i32
    %c0_i32_2 = arith.constant 0 : i32
    return %arg0, %c0_i32, %c0_i32_0, %c0_i32_1 : i32, i32, i32, i32
  }
  func.func @transform_1(%arg0: i32) -> (i32, i32) {
    %c0_i32 = arith.constant 0 : i32
    %c0_i32_0 = arith.constant 0 : i32
    %c0_i32_1 = arith.constant 0 : i32
    return %c0_i32, %c0_i32_0 : i32, i32
  }
  func.func @transform_2(%arg0: i32) -> (i32, i32) {
    %c0_i32 = arith.constant 0 : i32
    %c0_i32_0 = arith.constant 0 : i32
    %c0_i32_1 = arith.constant 0 : i32
    return %c0_i32, %c0_i32_0 : i32, i32
  }
  func.func @transform_3(%arg0: i32) -> (i32, i32) {
    %c0_i32 = arith.constant 0 : i32
    %c0_i32_0 = arith.constant 0 : i32
    %c0_i32_1 = arith.constant 0 : i32
    return %c0_i32, %c0_i32_0 : i32, i32
  }
  func.func @transform_4(%arg0: i32) -> (i32, i32) {
    %c0_i32 = arith.constant 0 : i32
    %c0_i32_0 = arith.constant 0 : i32
    %c0_i32_1 = arith.constant 0 : i32
    return %c0_i32, %c0_i32_0 : i32, i32
  }
  func.func @transform_5(%arg0: i32) -> (i32, i32) {
    %c0_i32 = arith.constant 0 : i32
    %c0_i32_0 = arith.constant 0 : i32
    %c0_i32_1 = arith.constant 0 : i32
    return %c0_i32, %c0_i32_0 : i32, i32
  }
  func.func @transform_6(%arg0: i32) -> (i32, i32, i32) {
    %c0_i32 = arith.constant 0 : i32
    %c0_i32_0 = arith.constant 0 : i32
    %c0_i32_1 = arith.constant 0 : i32
    return %arg0, %c0_i32, %c0_i32_0 : i32, i32, i32
  }
}

</mosaic_0001>

<bundles_post_ra>
// kernel: tpu_custom_call.1
= control target key start
LH: loop header
LB: loop body
LE: loop exit
PB: predicated region body
PF: predicated region fallthrough
CT: control target
= control target key end

     0   :  { %11 = vsyncpa [#allocation3], 0  ;;  %s1185_s0 = inlined_call_operand.hbm [shape: f32[2,4,16,16], index: 0, kind: input, shape index: {}]   ;;  %s1186_s1 = inlined_call_operand.vmem [shape: f32[32,16], index: 1, kind: input, shape index: {}]   ;;  %s1187_s2 = inlined_call_operand.hbm [shape: f32[8,64], index: 2, kind: input, shape index: {}]   ;;  %s1188_s3 = inlined_call_operand.vmem [shape: f32[8,1], index: 3, kind: input, shape index: {}]   ;;  %s1189_s4 = inlined_call_operand.vmem [shape: f32[16,256], index: 4, kind: input, shape index: {}]   ;;  %s1190_s5 = inlined_call_operand.vmem [shape: f32[16,256], index: 5, kind: input, shape index: {}]   ;;  %s1191_s6 = inlined_call_operand.hbm [shape: f32[2,8,256], index: 6, kind: output, shape index: {}]  }
   0x1   :  { %12 = vsyncpa [#allocation6], 0 }
   0x2   :  { %13 = vsyncpa [#allocation4], 0  ;;  %s1005_s21 = smov [#allocation2]   ;;  %s933_s25 = scalar_lea.hbm %s1185_s0, 2048 }
   0x3   :  { %s19_s22 = sshll.u32 %s1005_s21, 4  ;;  %p934_p0 = scmp.ne.s32.totalorder %s1185_s0, %s933_s25  ;;  %s20_s22 = int_to_ptr.vmem [resolvable:$true] %s19_s22 }
   0x4   :  { %p937_p1 = scmp.lt.u32.totalorder %s933_s25, %s1185_s0 }
   0x6   :  { %p939_p2 = pnand %p937_p1, %p934_p0 }
   0x8   :  { %942 = shalt.err (!%p939_p2)
}
   0x9   :  { %s943_s30 = scalar_lea.vmem %s20_s22, 2048  ;;  %p948_p4 = scmp.lt.s32.totalorder %s20_s22, %s20_s22 }
   0xa   :  { %p944_p3 = scmp.ne.s32.totalorder %s20_s22, %s943_s30  ;;  %p949_p5 = scmp.lt.s32.totalorder %s943_s30, %s943_s30 }
   0xc   :  { %p950_p6 = por %p949_p5, %p948_p4 }
   0xe   :  { %p951_p7 = pnand %p950_p6, %p944_p3 }
  0x10   :  { %954 = shalt.err (!%p951_p7)
}
  0x11   :  { %s1006_s7 = smov 128   ;;  %s1007_s8 = smov 8  }
  0x12   :  { %25 = dma.hbm_to_vmem [thread:$0]  %s1185_s0, 2048, %s20_s22, [#allocation3], %s1006_s7, %s1006_s7, %s1007_s8  }
  0x13   :  { %s1008_s11 = smov [#allocation5]   ;;  %s955_s15 = scalar_lea.hbm %s1187_s2, 128 }
  0x14   :  { %s34_s12 = sshll.u32 %s1008_s11, 4  ;;  %p956_p8 = scmp.ne.s32.totalorder %s1187_s2, %s955_s15  ;;  %s35_s12 = int_to_ptr.vmem [resolvable:$true] %s34_s12 }
  0x15   :  { %p959_p9 = scmp.lt.u32.totalorder %s955_s15, %s1187_s2 }
  0x17   :  { %p961_p10 = pnand %p959_p9, %p956_p8 }
  0x19   :  { %964 = shalt.err (!%p961_p10)
}
  0x1a   :  { %s965_s20 = scalar_lea.vmem %s35_s12, 128  ;;  %p970_p12 = scmp.lt.s32.totalorder %s35_s12, %s35_s12 }
  0x1b   :  { %p966_p11 = scmp.ne.s32.totalorder %s35_s12, %s965_s20  ;;  %p971_p13 = scmp.lt.s32.totalorder %s965_s20, %s965_s20 }
  0x1d   :  { %p972_p0 = por %p971_p13, %p970_p12 }
  0x1f   :  { %p973_p1 = pnand %p972_p0, %p966_p11 }
  0x21   :  { %976 = shalt.err (!%p973_p1)
}
  0x22   :  { %37 = dma.hbm_to_vmem [thread:$0]  %s1187_s2, 128, %s35_s12, [#allocation6]  }
  0x23   :  { %999 = dma.done.wait [#allocation3], 2048  }
  0x24   :  { %1000 = vsyncadd [#allocation3], 4294965248 }
  0x25   :  { %1001 = dma.done.wait [#allocation6], 128  }
  0x26   :  { %1002 = vsyncadd [#allocation6], 4294967168  ;;  %v1009_v0 = vmov 0.0|0.0   ;;  %vm1010_vm0 = vmmov 0   ;;  %v1011_v1 = vmov 0.0   ;;  %v50_v2 = vld [vmem:[#allocation2] sm:$0xff] }
  0x27   :  { %834 = vmatprep.subr.bf16.mxu0 %v1009_v0  ;;  %846 = vmatprep.subr.bf16.mxu1 %v1009_v0  ;;  %v51_v3 = vld [vmem:[#allocation2 + $0x8] sm:$0xff]  ;;  %v58_v4 = vld [vmem:[#allocation2 + $0x40] sm:$0xff]  ;;  %v52_v7 = vld [vmem:[#allocation2 + $0x10] sm:$0xff]  ;;  %vm215_vm1 = vcmask 130048   ;;  %vm67_vm3 = vcmask 523264   ;;  %v1012_v39 = vmov 0  }
  0x28   :  { %768 = vmatprep.mubr.msk.f32.mxu0 %vm1010_vm0, %v1011_v1  ;;  %787 = vmatprep.mubr.msk.f32.mxu1 %vm1010_vm0, %v1011_v1  ;;  %v835_v5 = vpack.c.bf16 %v51_v3, %v50_v2  ;;  %v59_v6 = vld [vmem:[#allocation2 + $0x48] sm:$0xff]  ;;  %v53_v8 = vld [vmem:[#allocation2 + $0x18] sm:$0xff]  ;;  %v60_v10 = vld [vmem:[#allocation2 + $0x50] sm:$0xff]  ;;  %s1013_s20 = smov 112   ;;  %s1014_s0 = smov 80  }
  0x29   :  { %v847_v9 = vpack.c.bf16 %v59_v6, %v58_v4  ;;  %v61_v11 = vld [vmem:[#allocation2 + $0x58] sm:$0xff]  ;;  %v838_v12 = vpack.c.bf16 %v53_v8, %v52_v7  ;;  %v54_v14 = vld [vmem:[#allocation2 + $0x20] sm:$0xff]  ;;  %v55_v15 = vld [vmem:[#allocation2 + $0x28] sm:$0xff]  ;;  %932 = vset.pattern.permute.xlu0 %v1012_v39  ;;  %s1015_s21 = smov 96  }
  0x2a   :  { %836 = vmatpush3.bf16.msra.mxu0 %v835_v5  ;;  %v850_v13 = vpack.c.bf16 %v61_v11, %v60_v10  ;;  %v62_v16 = vld [vmem:[#allocation2 + $0x60] sm:$0xff]  ;;  %v63_v17 = vld [vmem:[#allocation2 + $0x68] sm:$0xff]  ;;  %v841_v18 = vpack.c.bf16 %v55_v15, %v54_v14  ;;  %v56_v20 = vld [vmem:[#allocation2 + $0x30] sm:$0xff] }
  0x2b   :  { %848 = vmatpush3.bf16.msra.mxu1 %v847_v9  ;;  %837 = vmatprep.subr.bf16.mxu0 %v1009_v0  ;;  %v853_v19 = vpack.c.bf16 %v63_v17, %v62_v16  ;;  %v57_v21 = vld [vmem:[#allocation2 + $0x38] sm:$0xff]  ;;  %v64_v22 = vld [vmem:[#allocation2 + $0x70] sm:$0xff]  ;;  %vm1082_vm2 = vmpackc.low %vm215_vm1, %vm215_vm1 }
  0x2c   :  { %849 = vmatprep.subr.bf16.mxu1 %v1009_v0  ;;  %v65_v23 = vld [vmem:[#allocation2 + $0x78] sm:$0xff]  ;;  %v844_v24 = vpack.c.bf16 %v57_v21, %v56_v20  ;;  %v66_v27 = vld [vmem:[#allocation5] sm:$0xff]  ;;  %v489_v29 = vld [vmem:[%s1190_s5 + $0x8] sm:$0xff] }
  0x2d   :  { %v856_v25 = vpack.c.bf16 %v65_v23, %v64_v22  ;;  %v211_v28 = vld [vmem:[%s1186_s1] sm:$0xff]  ;;  %v491_v30 = vld [vmem:[%s1190_s5 + $0x18] sm:$0xff]  ;;  %v490_v33 = vld [vmem:[%s1190_s5 + $0x10] sm:$0xff] }
  0x2e   :  { %839 = vmatpush3.bf16.msra.mxu0 %v838_v12  ;;  %v906_v31 = vpack.c.bf16 %v491_v30, %v489_v29  ;;  %v488_v32 = vld [vmem:[%s1190_s5] sm:$0xff]  ;;  %v212_v34 = vld [vmem:[%s1186_s1 + $0x8] sm:$0xff]  ;;  %v213_v35 = vld [vmem:[%s1186_s1 + $0x10] sm:$0xff] }
  0x2f   :  { %851 = vmatpush3.bf16.msra.mxu1 %v850_v13  ;;  %840 = vmatprep.subr.bf16.mxu0 %v1009_v0  ;;  %v908_v36 = vpack.c.bf16 %v490_v33, %v488_v32  ;;  %v214_v37 = vld [vmem:[%s1186_s1 + $0x18] sm:$0xff]  ;;  %v476_v38 = vld [vmem:[%s1188_s3] sm:$0xff]  ;;  %v485_v44 = vld [vmem:[%s1189_s4 + $0x8] sm:$0xff] }
  0x30   :  { %852 = vmatprep.subr.bf16.mxu1 %v1009_v0  ;;  %479 = vperm.xlu0 %932, %v476_v38   ;;  %v487_v45 = vld [vmem:[%s1189_s4 + $0x18] sm:$0xff]  ;;  %v484_v46 = vld [vmem:[%s1189_s4] sm:$0xff]  ;;  %v486_v48 = vld [vmem:[%s1189_s4 + $0x10] sm:$0xff]  ;;  %s1016_s4 = smov [#allocation7]  }
  0x31   :  { %v910_v47 = vpack.c.bf16 %v487_v45, %v485_v44  ;;  %v912_v49 = vpack.c.bf16 %v486_v48, %v484_v46  ;;  %s667_s2 = sshll.u32 %s1016_s4, 4  ;;  %s668_s2 = int_to_ptr.vmem [resolvable:$true] %s667_s2 }
  0x32   :  { %842 = vmatpush3.bf16.msra.mxu0 %v841_v18  ;;  %s977_s22 = scalar_lea.vmem %s668_s2, 512  ;;  %p982_p3 = scmp.lt.s32.totalorder %s668_s2, %s668_s2 }
  0x33   :  { %854 = vmatpush3.bf16.msra.mxu1 %v853_v19  ;;  %843 = vmatprep.subr.bf16.mxu0 %v1009_v0  ;;  %p978_p2 = scmp.ne.s32.totalorder %s668_s2, %s977_s22  ;;  %p983_p4 = scmp.lt.s32.totalorder %s977_s22, %s977_s22 }
  0x34   :  { %855 = vmatprep.subr.bf16.mxu1 %v1009_v0 }
  0x35   :  { %p984_p5 = por %p983_p4, %p982_p3 }
  0x36   :  { %845 = vmatpush3.bf16.msra.mxu0 %v844_v24 }
  0x37   :  { %857 = vmatpush3.bf16.msra.mxu1 %v856_v25  ;;  %860 = vmatprep.subr.msk.bf16.mxu0 %vm1082_vm2, %v835_v5  ;;  %p985_p6 = pnand %p984_p5, %p978_p2 }
  0x38   :  { %884 = vmatprep.subr.msk.bf16.mxu1 %vm1082_vm2, %v847_v9 }
  0x39   :  { %769 = vmatmul.mubr.msk.f32.vlgmr.msra.gmra.mrb[0].mxu0 %vm67_vm3, %v66_v27 }
  0x3a   :  { %788 = vmatmul.mubr.msk.f32.vlgmr.msra.gmra.mrb[0].mxu1 %vm67_vm3, %v66_v27  ;;  %806 = vmatprep.mubr.msk.f32.mxu0 %vm215_vm1, %v211_v28 }
  0x3b   :  { %828 = vmatprep.mubr.msk.f32.mxu1 %vm215_vm1, %v211_v28 }
  0x3f   :  { %863 = vmatpush3.bf16.xpose.msk.msra.mxu0 %vm1082_vm2, %v835_v5 }
  0x40   :  { %887 = vmatpush3.bf16.xpose.msk.msra.mxu1 %vm1082_vm2, %v847_v9  ;;  %866 = vmatprep.subr.msk.bf16.mxu0 %vm1082_vm2, %v838_v12 }
  0x41   :  { %890 = vmatprep.subr.msk.bf16.mxu1 %vm1082_vm2, %v850_v13 }
  0x47   :  { %869 = vmatpush3.bf16.xpose.msk.msra.mxu0 %vm1082_vm2, %v838_v12 }
  0x48   :  { %893 = vmatpush3.bf16.xpose.msk.msra.mxu1 %vm1082_vm2, %v850_v13  ;;  %872 = vmatprep.subr.msk.bf16.mxu0 %vm1082_vm2, %v841_v18 }
  0x49   :  { %896 = vmatprep.subr.msk.bf16.mxu1 %vm1082_vm2, %v853_v19 }
  0x4f   :  { %875 = vmatpush3.bf16.xpose.msk.msra.mxu0 %vm1082_vm2, %v841_v18 }
  0x50   :  { %899 = vmatpush3.bf16.xpose.msk.msra.mxu1 %vm1082_vm2, %v853_v19  ;;  %878 = vmatprep.subr.msk.bf16.mxu0 %vm1082_vm2, %v844_v24 }
  0x51   :  { %902 = vmatprep.subr.msk.bf16.mxu1 %vm1082_vm2, %v856_v25 }
  0x57   :  { %881 = vmatpush3.bf16.xpose.msk.msra.mxu0 %vm1082_vm2, %v844_v24 }
  0x58   :  { %905 = vmatpush3.bf16.xpose.msk.msra.mxu1 %vm1082_vm2, %v856_v25  ;;  %911 = vmatprep.subr.bf16.mxu0 %v910_v47 }
  0x59   :  { %907 = vmatprep.subr.bf16.mxu1 %v906_v31 }
  0x5e   :  { %807 = vmatmul.mubr.msk.f32.vlgmr.msra.gmra.mrb[2].mxu0 %vm215_vm1, %v212_v34 }
  0x5f   :  { %829 = vmatmul.mubr.msk.f32.vlgmr.msra.gmra.mrb[2].mxu1 %vm215_vm1, %v212_v34  ;;  %809 = vmatprep.mubr.msk.f32.mxu0 %vm215_vm1, %v213_v35 }
  0x60   :  { %831 = vmatprep.mubr.msk.f32.mxu1 %vm215_vm1, %v213_v35  ;;  %909 = vmatpush1.bf16.msra.mxu1 %v908_v36 }
  0x61   :  { %913 = vmatpush1.bf16.msra.mxu0 %v912_v49 }
  0x62   :  { %810 = vmatmul.mubr.msk.f32.gmra.mrb[4].mxu0 %vm215_vm1, %v214_v37 }
  0x63   :  { %832 = vmatmul.mubr.msk.f32.gmra.mrb[4].mxu1 %vm215_vm1, %v214_v37  ;;  %645 = vmatprep.mubr.f32.mxu0 %v1011_v1 }
  0x64   :  { %562 = vmatprep.mubr.f32.mxu1 %v1011_v1 }
  0xaf   :  { %v480_v58 = vpop.permute.xlu0 %479 }
 0x10c   :  { %v137_v40 = vpop.f32.mrb[0].mxu0 }
 0x10d   :  { %706 = vmatmul.mubr.msk.f32.vlgmr.msra.gmra.mrb[6].mxu1 %vm215_vm1, %v137_v40  ;;  %v770_v41 = vpop.f32.mrb[1].mxu0  ;;  %v207_v42 = vpop.f32.mrb[0].mxu1 }
 0x10e   :  { %568 = vmatprep.mubr.f32.mxu1 %v1011_v1  ;;  %v789_v43 = vpop.f32.mrb[1].mxu1 }
 0x111   :  { %707 = vmatmul.mubr.msk.f32.gmra.mrb[8].mxu1 %vm215_vm1, %v207_v42 }
 0x131   :  { %v808_v50 = vpop.f32.mrb[2].mxu0 }
 0x132   :  { %v830_v51 = vpop.f32.mrb[2].mxu1  ;;  %448 = vrot.lane.b32.xlu0 %v808_v50, %s1013_s20  ;;  %v318_v52 = vpop.f32.mrb[3].mxu0 }
 0x133   :  { %450 = vrot.lane.b32.xlu1 %v830_v51, %s1013_s20  ;;  %v427_v53 = vpop.f32.mrb[3].mxu1 }
 0x135   :  { %v811_v54 = vpop.f32.mrb[4].mxu0 }
 0x136   :  { %468 = vrot.lane.b32.xlu0 %v811_v54, %s1014_s0  ;;  %v328_v55 = vpop.f32.mrb[5].mxu0  ;;  %v833_v56 = vpop.f32.mrb[4].mxu1 }
 0x137   :  { %458 = vrot.lane.b32.xlu1 %v328_v55, %s1015_s21  ;;  %v437_v57 = vpop.f32.mrb[5].mxu1 }
 0x13a   :  { %470 = vrot.lane.b32.xlu0 %v833_v56, %s1014_s0 }
 0x13b   :  { %460 = vrot.lane.b32.xlu1 %v437_v57, %s1015_s21 }
 0x1a4   :  { %v449_v59 = vpop.permute.xlu0 %448 }
 0x1a5   :  { %v451_v60 = vpop.permute.xlu1 %450  ;;  %v454_v61 = vadd.f32 %v449_v59, %v318_v52 }
 0x1a6   :  { %v455_v2 = vadd.f32 %v451_v60, %v427_v53 }
 0x1a8   :  { %v469_v62 = vpop.permute.xlu0 %468 }
 0x1a9   :  { %v459_v63 = vpop.permute.xlu1 %458 }
 0x1aa   :  { %v464_v0 = vadd.f32 %v459_v63, %v454_v61 }
 0x1ac   :  { %v474_v3 = vadd.f32 %v469_v62, %v464_v0  ;;  %v471_v7 = vpop.permute.xlu0 %470 }
 0x1ad   :  { %v461_v4 = vpop.permute.xlu1 %460 }
 0x1ae   :  { %v482_v5 = vadd.f32 %v480_v58, %v474_v3  ;;  %v465_v6 = vadd.f32 %v461_v4, %v455_v2 }
 0x1b0   :  { %v475_v8 = vadd.f32 %v471_v7, %v465_v6  ;;  %708 = vmatmul.mubr.msk.f32.vlgmr.msra.gmra.mrb[6].mxu0 %vm215_vm1, %v482_v5 }
 0x1b1   :  { %651 = vmatprep.mubr.f32.mxu0 %v1011_v1 }
 0x1b2   :  { %v483_v9 = vadd.f32 %v480_v58, %v475_v8 }
 0x1b4   :  { %709 = vmatmul.mubr.msk.f32.gmra.mrb[8].mxu0 %vm215_vm1, %v483_v9 }
 0x1e0   :  { %v564_v10 = vpop.f32.mrb[6].mxu1 }
 0x1e1   :  { %v566_v11 = vpop.f32.mrb[7].mxu1 }
 0x1e4   :  { %v570_v12 = vpop.f32.mrb[8].mxu1 }
 0x1e5   :  { %v572_v13 = vpop.f32.mrb[9].mxu1 }
 0x283   :  { %v647_v14 = vpop.f32.mrb[6].mxu0 }
 0x284   :  { %v648_v15 = vadd.f32 %v647_v14, %v564_v10  ;;  %v649_v16 = vpop.f32.mrb[7].mxu0 }
 0x285   :  { %v650_v17 = vadd.f32 %v649_v16, %v566_v11 }
 0x286   :  { %658 = vst [vmem:[#allocation7] sm:$0xff] %v648_v15 }
 0x287   :  { %659 = vst [vmem:[#allocation7 + $0x8] sm:$0xff] %v650_v17  ;;  %v653_v18 = vpop.f32.mrb[8].mxu0 }
 0x288   :  { %v654_v19 = vadd.f32 %v653_v18, %v570_v12  ;;  %v655_v20 = vpop.f32.mrb[9].mxu0 }
 0x289   :  { %v656_v21 = vadd.f32 %v655_v20, %v572_v13 }
 0x28a   :  { %660 = vst [vmem:[#allocation7 + $0x10] sm:$0xff] %v654_v19 }
 0x28b   :  { %661 = vst [vmem:[#allocation7 + $0x18] sm:$0xff] %v656_v21 }
 0x28c   :  { %988 = shalt.err (!%p985_p6)
}
 0x28d   :  { %s989_s25 = scalar_lea.hbm %s1191_s6, 512 }
 0x28e   :  { %p990_p7 = scmp.ne.s32.totalorder %s1191_s6, %s989_s25  ;;  %p993_p8 = scmp.lt.u32.totalorder %s989_s25, %s1191_s6 }
 0x290   :  { %p995_p9 = pnand %p993_p8, %p990_p7 }
 0x292   :  { %998 = shalt.err (!%p995_p9)
}
 0x293   :  { %s1017_s30 = smov 256   ;;  %s1018_s7 = smov 16  }
 0x294   :  { %673 = dma.vmem_to_hbm [thread:$0]  %s668_s2, 512, %s1191_s6, [#allocation4], %s1017_s30, %s1017_s30, %s1018_s7  }
 0x295   :  { %1003 = dma.done.wait [#allocation4], 512  }
 0x296   :  { %1004 = vsyncadd [#allocation4], 4294966784 }
 0x297   :  { %677 = vsyncpa [#allocation3], 1 }
 0x298   :  { %678 = vsyncpa [#allocation6], 1 }
 0x299   :  { %679 = vsyncpa [#allocation4], 1 }

</bundles_post_ra>
